<compile_context>
chip_gen: v5e
topology: v5e:2x2
jax: 0.10.0
libtpu: 0.0.40
codegen_flags: <defaults>
</compile_context>

<pallas_src>
import jax
import jax.numpy as jnp
from jax.experimental import pallas as pl
from jax.experimental.pallas import tpu as pltpu

_LANES = 128
_SUBLANES = 8


def _local_loss_mean_kernel(x_ref, sum_ref, sq_ref):
    # x_ref:   (bn, tr, 128) tile covering bn samples (input dtype)
    # sum_ref: (bn, 8, 128) f32 running elementwise sum per sample
    # sq_ref:  (bn, 8, 128) f32 running elementwise sum of squares
    k = pl.program_id(1)

    @pl.when(k == 0)
    def _init():
        sum_ref[...] = jnp.zeros_like(sum_ref)
        sq_ref[...] = jnp.zeros_like(sq_ref)

    x = x_ref[...].astype(jnp.float32)                     # (bn, tr, 128)
    bn, tr, _ = x.shape
    # Tile-aligned reshape (free): groups of 8 sublanes -> one vreg each.
    x4 = x.reshape(bn, tr // _SUBLANES, _SUBLANES, _LANES)
    # Reduce only over the major (vreg-group) axis: pure VPU adds, no XLU in
    # the steady-state loop; the cross-lane reduce happens once, in JAX.
    sum_ref[...] += jnp.sum(x4, axis=1)
    sq_ref[...] += jnp.sum(x4 * x4, axis=1)


def _round_up(a, b):
    return ((a + b - 1) // b) * b


def _target_block_bytes():
    # Generation-aware block sizing: bigger blocks where VMEM is plentiful
    # (v5e/v6e: 128 MiB physical), conservative on v7x (64 MiB per TC).
    target = 4 << 20
    try:
        info = pltpu.get_tpu_info()
        if getattr(info, "vmem_capacity_bytes", 0) >= (96 << 20):
            target = 8 << 20
    except Exception:
        pass
    return target


def local_loss_mean(x):
    """x: (N, C, H, W) array. Returns the scalar loss (float32)."""
    n, c, h, w = x.shape
    d = c * h * w
    itemsize = jnp.dtype(x.dtype).itemsize

    # Sublane packing granularity: 8 for f32, 16 for bf16, 32 for int8.
    pack = max(_SUBLANES, 32 // itemsize)
    target = _target_block_bytes()

    # Rows of 128 lanes per sample; zero-padding is sum / sum-of-sq neutral.
    r_raw = pl.cdiv(d, _LANES)
    r_base = _round_up(r_raw, pack)
    per_sample_bytes = r_base * _LANES * itemsize

    if per_sample_bytes <= target:
        # Small per-sample slab: pack many samples per grid step so DMAs are
        # multi-MiB and the fixed per-step overhead amortizes.
        tr = r_base
        k_blocks = 1
        bn = max(1, target // per_sample_bytes)
        bn = min(bn, 256)   # keep each (bn, 8, 128) f32 output block <= 1 MiB
        bn = min(bn, n)
    else:
        # Large per-sample slab: one sample per block; split its rows EVENLY
        # over k_blocks so padding waste is at most ~pack rows per block.
        bn = 1
        tr_cap = max(pack, (target // (_LANES * itemsize)) // pack * pack)
        k_blocks = pl.cdiv(r_base, tr_cap)
        tr = _round_up(pl.cdiv(r_base, k_blocks), pack)

    r_pad = tr * k_blocks
    d_pad = r_pad * _LANES
    n_pad = _round_up(n, bn)

    # Pad only when needed; with allow_input_fusion=[True] (and the wrapper
    # jitted) XLA fuses the pad/reshape into the pallas_call operand instead
    # of writing a second full-size copy of x to HBM.
    x_flat = x.reshape(n, d)
    if d_pad != d:
        x_flat = jnp.pad(x_flat, ((0, 0), (0, d_pad - d)))
    if n_pad != n:
        x_flat = jnp.pad(x_flat, ((0, n_pad - n), (0, 0)))
    x_tiled = x_flat.reshape(n_pad, r_pad, _LANES)

    grid = (n_pad // bn, k_blocks)

    in_block_bytes = bn * tr * _LANES * itemsize
    in_block_f32 = bn * tr * _LANES * 4
    out_block_bytes = bn * _SUBLANES * _LANES * 4
    vmem_limit = int(min(64 << 20,
                         max(32 << 20,
                             2 * in_block_bytes + in_block_f32
                             + 4 * out_block_bytes + (4 << 20))))

    cost = pl.CostEstimate(
        flops=3 * n_pad * d_pad,
        transcendentals=0,
        bytes_accessed=n_pad * d_pad * itemsize
        + 2 * n_pad * _SUBLANES * _LANES * 4,
    )

    sums, sqs = pl.pallas_call(
        _local_loss_mean_kernel,
        out_shape=(
            jax.ShapeDtypeStruct((n_pad, _SUBLANES, _LANES), jnp.float32),
            jax.ShapeDtypeStruct((n_pad, _SUBLANES, _LANES), jnp.float32),
        ),
        grid=grid,
        in_specs=[pl.BlockSpec((bn, tr, _LANES), lambda i, k: (i, k, 0))],
        out_specs=(
            pl.BlockSpec((bn, _SUBLANES, _LANES), lambda i, k: (i, 0, 0)),
            pl.BlockSpec((bn, _SUBLANES, _LANES), lambda i, k: (i, 0, 0)),
        ),
        compiler_params=pltpu.CompilerParams(
            dimension_semantics=("parallel", "arbitrary"),
            vmem_limit_bytes=vmem_limit,
            allow_input_fusion=[True],
        ),
        cost_estimate=cost,
    )(x_tiled)

    # Tiny JAX epilogue: final lane/sublane reduce, means, sqrt, mean over N.
    inv_d = 1.0 / float(d)
    m = jnp.sum(sums[:n].reshape(n, -1), axis=1) * inv_d     # per-sample E[x]
    ms = jnp.sum(sqs[:n].reshape(n, -1), axis=1) * inv_d     # per-sample E[x^2]
    loss = jnp.sqrt(jnp.mean(jnp.square(m))) + jnp.sqrt(
        jnp.mean(jnp.square(ms - 1.0)))
    return loss.astype(jnp.float32)


def _reference(x):
    # Pure-JAX replica of the PyTorch forward (computed in f32).
    xf = x.astype(jnp.float32)
    m = jnp.mean(xf, axis=(2, 3), keepdims=True)
    m = jnp.mean(m, axis=1, keepdims=True)
    ms = jnp.mean(jnp.square(xf), axis=(2, 3), keepdims=True)
    ms = jnp.mean(ms, axis=1, keepdims=True)
    return jnp.sqrt(jnp.mean(jnp.square(m))) + jnp.sqrt(
        jnp.mean(jnp.square(ms - 1.0)))


if __name__ == "__main__":
    key = jax.random.PRNGKey(0)
    # NCHW, small shapes: batch=2, channels=4, spatial=16x16
    x = jax.random.normal(key, (2, 4, 16, 16), dtype=jnp.float32)

    loss = jax.block_until_ready(jax.jit(local_loss_mean)(x))
    ref = jax.block_until_ready(_reference(x))

    assert jnp.allclose(loss, ref, rtol=1e-5, atol=1e-5), (loss, ref)
    print("KERNEL_OK")
</pallas_src>

<mosaic_0001>
module attributes {stable_mosaic.version = 11 : i64} {
  func.func @_local_loss_mean_kernel(%arg0: i32, %arg1: i32, %arg2: memref<2x8x128xf32, #tpu.memory_space<vmem>>, %arg3: memref<2x8x128xf32, #tpu.memory_space<vmem>>, %arg4: memref<2x8x128xf32, #tpu.memory_space<vmem>>) attributes {dimension_semantics = [#tpu.dimension_semantics<parallel>, #tpu.dimension_semantics<arbitrary>], iteration_bounds = array<i64: 1, 1>, scalar_prefetch = 0 : i64, scratch_operands = 0 : i64, tpu.core_type = #tpu.core_type<tc>, window_params = [{transform_indices = @transform_0, window_bounds = array<i64: 2, 8, 128>}, {transform_indices = @transform_1, window_bounds = array<i64: 2, 8, 128>}, {transform_indices = @transform_2, window_bounds = array<i64: 2, 8, 128>}]} {
    %c0_i32 = arith.constant 0 : i32
    %0 = arith.cmpi eq, %arg1, %c0_i32 : i32
    %1 = arith.extui %0 : i1 to i32
    %c0_i32_0 = arith.constant 0 : i32
    %2 = arith.cmpi ne, %1, %c0_i32_0 : i32
    scf.if %2 {
      %cst_16 = arith.constant 0.000000e+00 : f32
      %14 = vector.broadcast %cst_16 : f32 to vector<2x8x128xf32>
      %c0_17 = arith.constant 0 : index
      %c0_18 = arith.constant 0 : index
      %c0_19 = arith.constant 0 : index
      %15 = vector.load %arg3[%c0_17, %c0_18, %c0_19] : memref<2x8x128xf32, #tpu.memory_space<vmem>>, vector<2x8x128xf32>
      tpu.vector_store %arg3[%c0_17, %c0_18, %c0_19], %14 {strides = array<i32>} : memref<2x8x128xf32, #tpu.memory_space<vmem>>, vector<2x8x128xf32>,
      %cst_20 = arith.constant 0.000000e+00 : f32
      %16 = vector.broadcast %cst_20 : f32 to vector<2x8x128xf32>
      %c0_21 = arith.constant 0 : index
      %c0_22 = arith.constant 0 : index
      %c0_23 = arith.constant 0 : index
      %17 = vector.load %arg4[%c0_21, %c0_22, %c0_23] : memref<2x8x128xf32, #tpu.memory_space<vmem>>, vector<2x8x128xf32>
      tpu.vector_store %arg4[%c0_21, %c0_22, %c0_23], %16 {strides = array<i32>} : memref<2x8x128xf32, #tpu.memory_space<vmem>>, vector<2x8x128xf32>,
    } else {
    }
    %c0 = arith.constant 0 : index
    %c0_1 = arith.constant 0 : index
    %c0_2 = arith.constant 0 : index
    %3 = vector.load %arg2[%c0, %c0_1, %c0_2] : memref<2x8x128xf32, #tpu.memory_space<vmem>>, vector<2x8x128xf32>
    %4 = vector.shape_cast %3 : vector<2x8x128xf32> to vector<2x1x8x128xf32>
    %c0_3 = arith.constant 0 : index
    %c0_4 = arith.constant 0 : index
    %c0_5 = arith.constant 0 : index
    %5 = vector.load %arg3[%c0_3, %c0_4, %c0_5] : memref<2x8x128xf32, #tpu.memory_space<vmem>>, vector<2x8x128xf32>
    %cst = arith.constant dense<0.000000e+00> : vector<2x8x128xf32>
    %6 = vector.multi_reduction <add>, %4, %cst [1] : vector<2x1x8x128xf32> to vector<2x8x128xf32>
    %7 = arith.addf %5, %6 : vector<2x8x128xf32>
    %c0_6 = arith.constant 0 : index
    %c0_7 = arith.constant 0 : index
    %c0_8 = arith.constant 0 : index
    %8 = vector.load %arg3[%c0_6, %c0_7, %c0_8] : memref<2x8x128xf32, #tpu.memory_space<vmem>>, vector<2x8x128xf32>
    tpu.vector_store %arg3[%c0_6, %c0_7, %c0_8], %7 {strides = array<i32>} : memref<2x8x128xf32, #tpu.memory_space<vmem>>, vector<2x8x128xf32>,
    %c0_9 = arith.constant 0 : index
    %c0_10 = arith.constant 0 : index
    %c0_11 = arith.constant 0 : index
    %9 = vector.load %arg4[%c0_9, %c0_10, %c0_11] : memref<2x8x128xf32, #tpu.memory_space<vmem>>, vector<2x8x128xf32>
    %10 = arith.mulf %4, %4 : vector<2x1x8x128xf32>
    %cst_12 = arith.constant dense<0.000000e+00> : vector<2x8x128xf32>
    %11 = vector.multi_reduction <add>, %10, %cst_12 [1] : vector<2x1x8x128xf32> to vector<2x8x128xf32>
    %12 = arith.addf %9, %11 : vector<2x8x128xf32>
    %c0_13 = arith.constant 0 : index
    %c0_14 = arith.constant 0 : index
    %c0_15 = arith.constant 0 : index
    %13 = vector.load %arg4[%c0_13, %c0_14, %c0_15] : memref<2x8x128xf32, #tpu.memory_space<vmem>>, vector<2x8x128xf32>
    tpu.vector_store %arg4[%c0_13, %c0_14, %c0_15], %12 {strides = array<i32>} : memref<2x8x128xf32, #tpu.memory_space<vmem>>, vector<2x8x128xf32>,
    return
  }
  func.func @transform_0(%arg0: i32, %arg1: i32) -> (i32, i32, i32) {
    %c0_i32 = arith.constant 0 : i32
    %c0_i32_0 = arith.constant 0 : i32
    return %arg0, %arg1, %c0_i32 : i32, i32, i32
  }
  func.func @transform_1(%arg0: i32, %arg1: i32) -> (i32, i32, i32) {
    %c0_i32 = arith.constant 0 : i32
    %c0_i32_0 = arith.constant 0 : i32
    %c0_i32_1 = arith.constant 0 : i32
    return %arg0, %c0_i32, %c0_i32_0 : i32, i32, i32
  }
  func.func @transform_2(%arg0: i32, %arg1: i32) -> (i32, i32, i32) {
    %c0_i32 = arith.constant 0 : i32
    %c0_i32_0 = arith.constant 0 : i32
    %c0_i32_1 = arith.constant 0 : i32
    return %arg0, %c0_i32, %c0_i32_0 : i32, i32, i32
  }
}

</mosaic_0001>

<bundles_post_ra>
// kernel: local_loss_mean.1
= control target key start
LH: loop header
LB: loop body
LE: loop exit
PB: predicated region body
PF: predicated region fallthrough
CT: control target
= control target key end

     0   :  { %s80_s0 = inlined_call_operand.vmem [shape: f32[2,8,128], index: 0, kind: input, shape index: {}]   ;;  %s81_s1 = inlined_call_operand.vmem [shape: f32[2,8,128], index: 1, kind: output, shape index: {0}]   ;;  %s82_s2 = inlined_call_operand.vmem [shape: f32[2,8,128], index: 2, kind: output, shape index: {1}]  }
   0x1   :  { %v18_v0 = vld [vmem:[%s80_s0] sm:$0xff]  ;;  %v19_v1 = vld [vmem:[%s80_s0 + $0x8] sm:$0xff] }
   0x2   :  { %v30_v2 = vmul.f32 %v18_v0, %v18_v0  ;;  %v31_v3 = vmul.f32 %v19_v1, %v19_v1  ;;  %26 = vst [vmem:[%s81_s1] sm:$0xff] %v18_v0 }
   0x3   :  { %27 = vst [vmem:[%s81_s1 + $0x8] sm:$0xff] %v19_v1 }
   0x4   :  { %36 = vst [vmem:[%s82_s2] sm:$0xff] %v30_v2 }
   0x5   :  { %37 = vst [vmem:[%s82_s2 + $0x8] sm:$0xff] %v31_v3 }

</bundles_post_ra>
